<compile_context>
chip_gen: v6e
topology: v6e:2x2x1
jax: 0.10.0
libtpu: 0.0.40
codegen_flags: <defaults>
</compile_context>

<pallas_src>
import math
from functools import partial

import jax
import jax.numpy as jnp
from jax.experimental import pallas as pl
from jax.experimental.pallas import tpu as pltpu


# ----------------------------------------------------------------------------
# Fused AttentionLayer kernel: one grid step = block_b batch elements.
# ----------------------------------------------------------------------------
def _attention_layer_kernel(q_ref, k_ref, v_ref,
                            wq_ref, bq_ref, wk_ref, bk_ref, wv_ref, bv_ref,
                            wo_ref, bo_ref,
                            o_ref,
                            *, n_heads, d_k, d_v):
    f32 = jnp.float32
    bb, L, D = q_ref.shape
    S = k_ref.shape[1]

    # Flatten the block's batch*seq rows so each projection is a single MXU matmul
    # over all rows of the block (row count is the only big axis at these shapes).
    q2 = q_ref[...].reshape(bb * L, D).astype(f32)
    k2 = k_ref[...].reshape(bb * S, D).astype(f32)
    v2 = v_ref[...].reshape(bb * S, D).astype(f32)

    scale = 1.0 / math.sqrt(d_k)  # FullAttention default: 1/sqrt(E)
    # Fold the softmax scale into Q (cheaper than scaling every (L, S) score).
    Q = (jnp.dot(q2, wq_ref[...], preferred_element_type=f32) + bq_ref[...]) * scale
    K = jnp.dot(k2, wk_ref[...], preferred_element_type=f32) + bk_ref[...]
    V = jnp.dot(v2, wv_ref[...], preferred_element_type=f32) + bv_ref[...]

    Q3 = Q.reshape(bb, L, n_heads * d_k)
    K3 = K.reshape(bb, S, n_heads * d_k)
    V3 = V.reshape(bb, S, n_heads * d_v)

    # Per-head batched attention; outputs stay in registers (no VMEM slab).
    head_outs = []
    for h in range(n_heads):  # static unroll (few heads); heads are lane slices
        Qh = Q3[:, :, h * d_k:(h + 1) * d_k]          # (bb, L, d_k)
        Kh = K3[:, :, h * d_k:(h + 1) * d_k]          # (bb, S, d_k)
        Vh = V3[:, :, h * d_v:(h + 1) * d_v]          # (bb, S, d_v)

        s = jnp.einsum('ble,bse->bls', Qh, Kh,
                       preferred_element_type=f32)    # (bb, L, S)
        s = s - jnp.max(s, axis=-1, keepdims=True)
        p = jnp.exp(s)
        inv = pl.reciprocal(jnp.sum(p, axis=-1, keepdims=True), approx=True)
        oh = jnp.einsum('bls,bsd->bld', p * inv, Vh,
                        preferred_element_type=f32)   # (bb, L, d_v)
        head_outs.append(oh)

    # In-register lane concat of head outputs (replaces the old VMEM slab:
    # no masked 8-lane stores, no full-slab reload, no store->load sync point).
    ctx = jnp.concatenate(head_outs, axis=-1).reshape(bb * L, n_heads * d_v)

    # Single output projection over all block rows; one contiguous (rows, D) store.
    out = jnp.dot(ctx, wo_ref[...], preferred_element_type=f32) + bo_ref[...]
    o_ref[...] = out.astype(o_ref.dtype)


def _pick_block_b(B, L, S):
    """Pick batch-elements-per-grid-step.

    Single grid step (block_b = B) unless the batch is large enough that
    splitting still leaves every block with >= ~256 projection rows; target
    ~512 rows/step (measured tile sweeps: 512-row tiles reach ~85% of roofline
    vs ~29% at 128).  Grid iteration is a serial loop on v5e/v6e (1 TC), so a
    split only ever helps when each block carries substantial work.
    """
    rows_per_b = max(L, S, 1)
    rows_target = 512
    min_split_rows = 256
    if B * rows_per_b <= max(rows_target, 2 * min_split_rows):
        return B                                  # one grid step, all rows at once
    cap = max(1, min(B, rows_target // rows_per_b))
    bb = 1
    for d in range(1, cap + 1):                   # largest divisor of B within cap
        if B % d == 0:
            bb = d
    return bb


def attention_layer(queries, keys, values, p, n_heads, block_b=None):
    """queries: (B, L, D); keys/values: (B, S, D); returns (B, L, D)."""
    B, L, D = queries.shape
    S = keys.shape[1]
    d_k = p["wq"].shape[1] // n_heads
    d_v = p["wv"].shape[1] // n_heads
    if block_b is None:
        block_b = _pick_block_b(B, L, S)
    assert B % block_b == 0
    grid = (B // block_b,)

    def full_spec(arr):
        nd = arr.ndim
        # Constant index_map -> weights/biases stay VMEM-resident across steps.
        return pl.BlockSpec(arr.shape, lambda i, _nd=nd: (0,) * _nd)

    kernel = partial(_attention_layer_kernel, n_heads=n_heads, d_k=d_k, d_v=d_v)
    out2d = pl.pallas_call(
        kernel,
        out_shape=jax.ShapeDtypeStruct((B * L, D), queries.dtype),
        grid=grid,
        in_specs=[
            pl.BlockSpec((block_b, L, D), lambda i: (i, 0, 0)),
            pl.BlockSpec((block_b, S, D), lambda i: (i, 0, 0)),
            pl.BlockSpec((block_b, S, D), lambda i: (i, 0, 0)),
            full_spec(p["wq"]), full_spec(p["bq"]),
            full_spec(p["wk"]), full_spec(p["bk"]),
            full_spec(p["wv"]), full_spec(p["bv"]),
            full_spec(p["wo"]), full_spec(p["bo"]),
        ],
        out_specs=pl.BlockSpec((block_b * L, D), lambda i: (i, 0)),
        compiler_params=pltpu.CompilerParams(dimension_semantics=("parallel",)),
    )(queries, keys, values,
      p["wq"], p["bq"], p["wk"], p["bk"], p["wv"], p["bv"], p["wo"], p["bo"])
    return out2d.reshape(B, L, D)


# ----------------------------------------------------------------------------
# Pure-JAX reference (for a sanity check against the kernel)
# ----------------------------------------------------------------------------
def attention_layer_ref(queries, keys, values, p, n_heads):
    B, L, D = queries.shape
    S = keys.shape[1]
    d_k = p["wq"].shape[1] // n_heads
    d_v = p["wv"].shape[1] // n_heads
    Q = (queries @ p["wq"] + p["bq"]).reshape(B, L, n_heads, d_k)
    K = (keys @ p["wk"] + p["bk"]).reshape(B, S, n_heads, d_k)
    V = (values @ p["wv"] + p["bv"]).reshape(B, S, n_heads, d_v)
    scale = 1.0 / math.sqrt(d_k)
    scores = jnp.einsum('blhe,bshe->bhls', Q, K) * scale
    A = jax.nn.softmax(scores, axis=-1)
    out = jnp.einsum('bhls,bshd->blhd', A, V).reshape(B, L, n_heads * d_v)
    return out @ p["wo"] + p["bo"]


# ----------------------------------------------------------------------------
# Deterministic parameter init (weights stored (in, out); biases (1, out))
# ----------------------------------------------------------------------------
def _init_linear(key, d_in, d_out):
    kw, kb = jax.random.split(key)
    w = 0.05 * jax.random.normal(kw, (d_in, d_out), jnp.float32)
    b = 0.05 * jax.random.normal(kb, (1, d_out), jnp.float32)
    return w, b


def init_attention_layer_params(key, d_model, n_heads):
    d_k = d_model // n_heads
    d_v = d_model // n_heads
    ks = jax.random.split(key, 4)
    wq, bq = _init_linear(ks[0], d_model, n_heads * d_k)
    wk, bk = _init_linear(ks[1], d_model, n_heads * d_k)
    wv, bv = _init_linear(ks[2], d_model, n_heads * d_v)
    wo, bo = _init_linear(ks[3], n_heads * d_v, d_model)
    return dict(wq=wq, bq=bq, wk=wk, bk=bk, wv=wv, bv=bv, wo=wo, bo=bo)


# ----------------------------------------------------------------------------
if __name__ == "__main__":
    # Small shapes consistent with AttentionLayer.forward (cross-attention: L != S).
    B, L, S, d_model, n_heads = 2, 8, 16, 32, 4

    key = jax.random.PRNGKey(0)
    kq, kk, kv, kp = jax.random.split(key, 4)
    queries = jax.random.normal(kq, (B, L, d_model), jnp.float32)
    keys = jax.random.normal(kk, (B, S, d_model), jnp.float32)
    values = jax.random.normal(kv, (B, S, d_model), jnp.float32)
    params = init_attention_layer_params(kp, d_model, n_heads)

    fn = jax.jit(partial(attention_layer, n_heads=n_heads))
    out = jax.block_until_ready(fn(queries, keys, values, params))

    assert out.shape == (B, L, d_model), out.shape
    assert bool(jnp.all(jnp.isfinite(out)))

    # Loose tolerance: approx reciprocal in the softmax changes low-order bits.
    ref = attention_layer_ref(queries, keys, values, params, n_heads)
    assert bool(jnp.max(jnp.abs(out - ref)) < 5e-2)

    print("KERNEL_OK")
</pallas_src>

<mosaic_0001>
module attributes {stable_mosaic.version = 11 : i64} {
  func.func @_attention_layer_kernel(%arg0: i32, %arg1: memref<2x8x32xf32, #tpu.memory_space<vmem>>, %arg2: memref<2x16x32xf32, #tpu.memory_space<vmem>>, %arg3: memref<2x16x32xf32, #tpu.memory_space<vmem>>, %arg4: memref<32x32xf32, #tpu.memory_space<vmem>>, %arg5: memref<1x32xf32, #tpu.memory_space<vmem>>, %arg6: memref<32x32xf32, #tpu.memory_space<vmem>>, %arg7: memref<1x32xf32, #tpu.memory_space<vmem>>, %arg8: memref<32x32xf32, #tpu.memory_space<vmem>>, %arg9: memref<1x32xf32, #tpu.memory_space<vmem>>, %arg10: memref<32x32xf32, #tpu.memory_space<vmem>>, %arg11: memref<1x32xf32, #tpu.memory_space<vmem>>, %arg12: memref<16x32xf32, #tpu.memory_space<vmem>>) attributes {dimension_semantics = [#tpu.dimension_semantics<parallel>], iteration_bounds = array<i64: 1>, scalar_prefetch = 0 : i64, scratch_operands = 0 : i64, tpu.core_type = #tpu.core_type<tc>, window_params = [{transform_indices = @transform_0, window_bounds = array<i64: 2, 8, 32>}, {transform_indices = @transform_1, window_bounds = array<i64: 2, 16, 32>}, {transform_indices = @transform_2, window_bounds = array<i64: 2, 16, 32>}, {pipeline_mode = #tpu.pipeline_mode<synchronous>, transform_indices = @transform_3, window_bounds = array<i64: 32, 32>}, {pipeline_mode = #tpu.pipeline_mode<synchronous>, transform_indices = @transform_4, window_bounds = array<i64: 1, 32>}, {pipeline_mode = #tpu.pipeline_mode<synchronous>, transform_indices = @transform_5, window_bounds = array<i64: 32, 32>}, {pipeline_mode = #tpu.pipeline_mode<synchronous>, transform_indices = @transform_6, window_bounds = array<i64: 1, 32>}, {pipeline_mode = #tpu.pipeline_mode<synchronous>, transform_indices = @transform_7, window_bounds = array<i64: 32, 32>}, {pipeline_mode = #tpu.pipeline_mode<synchronous>, transform_indices = @transform_8, window_bounds = array<i64: 1, 32>}, {pipeline_mode = #tpu.pipeline_mode<synchronous>, transform_indices = @transform_9, window_bounds = array<i64: 32, 32>}, {pipeline_mode = #tpu.pipeline_mode<synchronous>, transform_indices = @transform_10, window_bounds = array<i64: 1, 32>}, {transform_indices = @transform_11, window_bounds = array<i64: 16, 32>}]} {
    %c0 = arith.constant 0 : index
    %c0_0 = arith.constant 0 : index
    %c0_1 = arith.constant 0 : index
    %0 = vector.load %arg1[%c0, %c0_0, %c0_1] : memref<2x8x32xf32, #tpu.memory_space<vmem>>, vector<2x8x32xf32>
    %1 = vector.shape_cast %0 : vector<2x8x32xf32> to vector<16x32xf32>
    %c0_2 = arith.constant 0 : index
    %c0_3 = arith.constant 0 : index
    %c0_4 = arith.constant 0 : index
    %2 = vector.load %arg2[%c0_2, %c0_3, %c0_4] : memref<2x16x32xf32, #tpu.memory_space<vmem>>, vector<2x16x32xf32>
    %3 = vector.shape_cast %2 : vector<2x16x32xf32> to vector<32x32xf32>
    %c0_5 = arith.constant 0 : index
    %c0_6 = arith.constant 0 : index
    %c0_7 = arith.constant 0 : index
    %4 = vector.load %arg3[%c0_5, %c0_6, %c0_7] : memref<2x16x32xf32, #tpu.memory_space<vmem>>, vector<2x16x32xf32>
    %5 = vector.shape_cast %4 : vector<2x16x32xf32> to vector<32x32xf32>
    %c0_8 = arith.constant 0 : index
    %c0_9 = arith.constant 0 : index
    %6 = vector.load %arg4[%c0_8, %c0_9] : memref<32x32xf32, #tpu.memory_space<vmem>>, vector<32x32xf32>
    %cst = arith.constant dense<0.000000e+00> : vector<16x32xf32>
    %7 = tpu.matmul %1, %6, %cst {dimension_numbers = #tpu.dot_dimension_numbers<[1], [0], [0], [1], [0, 0, 1, 1], [], []>} : vector<16x32xf32>, vector<32x32xf32>, vector<16x32xf32> -> vector<16x32xf32>
    %c0_10 = arith.constant 0 : index
    %c0_11 = arith.constant 0 : index
    %8 = vector.load %arg5[%c0_10, %c0_11] : memref<1x32xf32, #tpu.memory_space<vmem>>, vector<1x32xf32>
    %9 = vector.broadcast %8 : vector<1x32xf32> to vector<16x32xf32>
    %10 = arith.addf %7, %9 : vector<16x32xf32>
    %cst_12 = arith.constant 0.353553385 : f32
    %11 = vector.broadcast %cst_12 : f32 to vector<16x32xf32>
    %12 = arith.mulf %10, %11 : vector<16x32xf32>
    %c0_13 = arith.constant 0 : index
    %c0_14 = arith.constant 0 : index
    %13 = vector.load %arg6[%c0_13, %c0_14] : memref<32x32xf32, #tpu.memory_space<vmem>>, vector<32x32xf32>
    %cst_15 = arith.constant dense<0.000000e+00> : vector<32x32xf32>
    %14 = tpu.matmul %3, %13, %cst_15 {dimension_numbers = #tpu.dot_dimension_numbers<[1], [0], [0], [1], [0, 0, 1, 1], [], []>} : vector<32x32xf32>, vector<32x32xf32>, vector<32x32xf32> -> vector<32x32xf32>
    %c0_16 = arith.constant 0 : index
    %c0_17 = arith.constant 0 : index
    %15 = vector.load %arg7[%c0_16, %c0_17] : memref<1x32xf32, #tpu.memory_space<vmem>>, vector<1x32xf32>
    %16 = vector.broadcast %15 : vector<1x32xf32> to vector<32x32xf32>
    %17 = arith.addf %14, %16 : vector<32x32xf32>
    %c0_18 = arith.constant 0 : index
    %c0_19 = arith.constant 0 : index
    %18 = vector.load %arg8[%c0_18, %c0_19] : memref<32x32xf32, #tpu.memory_space<vmem>>, vector<32x32xf32>
    %cst_20 = arith.constant dense<0.000000e+00> : vector<32x32xf32>
    %19 = tpu.matmul %5, %18, %cst_20 {dimension_numbers = #tpu.dot_dimension_numbers<[1], [0], [0], [1], [0, 0, 1, 1], [], []>} : vector<32x32xf32>, vector<32x32xf32>, vector<32x32xf32> -> vector<32x32xf32>
    %c0_21 = arith.constant 0 : index
    %c0_22 = arith.constant 0 : index
    %20 = vector.load %arg9[%c0_21, %c0_22] : memref<1x32xf32, #tpu.memory_space<vmem>>, vector<1x32xf32>
    %21 = vector.broadcast %20 : vector<1x32xf32> to vector<32x32xf32>
    %22 = arith.addf %19, %21 : vector<32x32xf32>
    %23 = vector.shape_cast %12 : vector<16x32xf32> to vector<2x8x32xf32>
    %24 = vector.shape_cast %17 : vector<32x32xf32> to vector<2x16x32xf32>
    %25 = vector.shape_cast %22 : vector<32x32xf32> to vector<2x16x32xf32>
    %26 = vector.extract_strided_slice %23 {offsets = [0, 0, 0], sizes = [2, 8, 8], strides = [1, 1, 1]} : vector<2x8x32xf32> to vector<2x8x8xf32>
    %27 = vector.extract_strided_slice %24 {offsets = [0, 0, 0], sizes = [2, 16, 8], strides = [1, 1, 1]} : vector<2x16x32xf32> to vector<2x16x8xf32>
    %28 = vector.extract_strided_slice %25 {offsets = [0, 0, 0], sizes = [2, 16, 8], strides = [1, 1, 1]} : vector<2x16x32xf32> to vector<2x16x8xf32>
    "tpu.trace_start"() <{level = 10 : i32, message = "ble,bse->bls"}> : () -> ()
    %cst_23 = arith.constant dense<0.000000e+00> : vector<2x8x16xf32>
    %29 = tpu.matmul %26, %27, %cst_23 {dimension_numbers = #tpu.dot_dimension_numbers<[2], [2], [1], [1], [0, 0, 0, 1, 1, 1], [0], [0]>} : vector<2x8x8xf32>, vector<2x16x8xf32>, vector<2x8x16xf32> -> vector<2x8x16xf32>
    "tpu.trace_stop"() : () -> ()
    %cst_24 = arith.constant dense<0xFF800000> : vector<2x8xf32>
    %30 = vector.multi_reduction <maximumf>, %29, %cst_24 [2] : vector<2x8x16xf32> to vector<2x8xf32>
    %31 = vector.shape_cast %30 : vector<2x8xf32> to vector<2x8x1xf32>
    %32 = vector.broadcast %31 : vector<2x8x1xf32> to vector<2x8x16xf32>
    %33 = arith.subf %29, %32 : vector<2x8x16xf32>
    %34 = math.exp %33 : vector<2x8x16xf32>
    %cst_25 = arith.constant dense<0.000000e+00> : vector<2x8xf32>
    %35 = vector.multi_reduction <add>, %34, %cst_25 [2] : vector<2x8x16xf32> to vector<2x8xf32>
    %36 = vector.shape_cast %35 : vector<2x8xf32> to vector<2x8x1xf32>
    %37 = tpu.reciprocal %36 {approx = true} : vector<2x8x1xf32> -> vector<2x8x1xf32>
    %38 = vector.broadcast %37 : vector<2x8x1xf32> to vector<2x8x16xf32>
    %39 = arith.mulf %34, %38 : vector<2x8x16xf32>
    "tpu.trace_start"() <{level = 10 : i32, message = "bls,bsd->bld"}> : () -> ()
    %cst_26 = arith.constant dense<0.000000e+00> : vector<2x8x8xf32>
    %40 = tpu.matmul %39, %28, %cst_26 {dimension_numbers = #tpu.dot_dimension_numbers<[2], [1], [1], [2], [0, 0, 0, 1, 1, 2], [0], [0]>} : vector<2x8x16xf32>, vector<2x16x8xf32>, vector<2x8x8xf32> -> vector<2x8x8xf32>
    "tpu.trace_stop"() : () -> ()
    %41 = vector.extract_strided_slice %23 {offsets = [0, 0, 8], sizes = [2, 8, 8], strides = [1, 1, 1]} : vector<2x8x32xf32> to vector<2x8x8xf32>
    %42 = vector.extract_strided_slice %24 {offsets = [0, 0, 8], sizes = [2, 16, 8], strides = [1, 1, 1]} : vector<2x16x32xf32> to vector<2x16x8xf32>
    %43 = vector.extract_strided_slice %25 {offsets = [0, 0, 8], sizes = [2, 16, 8], strides = [1, 1, 1]} : vector<2x16x32xf32> to vector<2x16x8xf32>
    "tpu.trace_start"() <{level = 10 : i32, message = "ble,bse->bls"}> : () -> ()
    %cst_27 = arith.constant dense<0.000000e+00> : vector<2x8x16xf32>
    %44 = tpu.matmul %41, %42, %cst_27 {dimension_numbers = #tpu.dot_dimension_numbers<[2], [2], [1], [1], [0, 0, 0, 1, 1, 1], [0], [0]>} : vector<2x8x8xf32>, vector<2x16x8xf32>, vector<2x8x16xf32> -> vector<2x8x16xf32>
    "tpu.trace_stop"() : () -> ()
    %cst_28 = arith.constant dense<0xFF800000> : vector<2x8xf32>
    %45 = vector.multi_reduction <maximumf>, %44, %cst_28 [2] : vector<2x8x16xf32> to vector<2x8xf32>
    %46 = vector.shape_cast %45 : vector<2x8xf32> to vector<2x8x1xf32>
    %47 = vector.broadcast %46 : vector<2x8x1xf32> to vector<2x8x16xf32>
    %48 = arith.subf %44, %47 : vector<2x8x16xf32>
    %49 = math.exp %48 : vector<2x8x16xf32>
    %cst_29 = arith.constant dense<0.000000e+00> : vector<2x8xf32>
    %50 = vector.multi_reduction <add>, %49, %cst_29 [2] : vector<2x8x16xf32> to vector<2x8xf32>
    %51 = vector.shape_cast %50 : vector<2x8xf32> to vector<2x8x1xf32>
    %52 = tpu.reciprocal %51 {approx = true} : vector<2x8x1xf32> -> vector<2x8x1xf32>
    %53 = vector.broadcast %52 : vector<2x8x1xf32> to vector<2x8x16xf32>
    %54 = arith.mulf %49, %53 : vector<2x8x16xf32>
    "tpu.trace_start"() <{level = 10 : i32, message = "bls,bsd->bld"}> : () -> ()
    %cst_30 = arith.constant dense<0.000000e+00> : vector<2x8x8xf32>
    %55 = tpu.matmul %54, %43, %cst_30 {dimension_numbers = #tpu.dot_dimension_numbers<[2], [1], [1], [2], [0, 0, 0, 1, 1, 2], [0], [0]>} : vector<2x8x16xf32>, vector<2x16x8xf32>, vector<2x8x8xf32> -> vector<2x8x8xf32>
    "tpu.trace_stop"() : () -> ()
    %56 = vector.extract_strided_slice %23 {offsets = [0, 0, 16], sizes = [2, 8, 8], strides = [1, 1, 1]} : vector<2x8x32xf32> to vector<2x8x8xf32>
    %57 = vector.extract_strided_slice %24 {offsets = [0, 0, 16], sizes = [2, 16, 8], strides = [1, 1, 1]} : vector<2x16x32xf32> to vector<2x16x8xf32>
    %58 = vector.extract_strided_slice %25 {offsets = [0, 0, 16], sizes = [2, 16, 8], strides = [1, 1, 1]} : vector<2x16x32xf32> to vector<2x16x8xf32>
    "tpu.trace_start"() <{level = 10 : i32, message = "ble,bse->bls"}> : () -> ()
    %cst_31 = arith.constant dense<0.000000e+00> : vector<2x8x16xf32>
    %59 = tpu.matmul %56, %57, %cst_31 {dimension_numbers = #tpu.dot_dimension_numbers<[2], [2], [1], [1], [0, 0, 0, 1, 1, 1], [0], [0]>} : vector<2x8x8xf32>, vector<2x16x8xf32>, vector<2x8x16xf32> -> vector<2x8x16xf32>
    "tpu.trace_stop"() : () -> ()
    %cst_32 = arith.constant dense<0xFF800000> : vector<2x8xf32>
    %60 = vector.multi_reduction <maximumf>, %59, %cst_32 [2] : vector<2x8x16xf32> to vector<2x8xf32>
    %61 = vector.shape_cast %60 : vector<2x8xf32> to vector<2x8x1xf32>
    %62 = vector.broadcast %61 : vector<2x8x1xf32> to vector<2x8x16xf32>
    %63 = arith.subf %59, %62 : vector<2x8x16xf32>
    %64 = math.exp %63 : vector<2x8x16xf32>
    %cst_33 = arith.constant dense<0.000000e+00> : vector<2x8xf32>
    %65 = vector.multi_reduction <add>, %64, %cst_33 [2] : vector<2x8x16xf32> to vector<2x8xf32>
    %66 = vector.shape_cast %65 : vector<2x8xf32> to vector<2x8x1xf32>
    %67 = tpu.reciprocal %66 {approx = true} : vector<2x8x1xf32> -> vector<2x8x1xf32>
    %68 = vector.broadcast %67 : vector<2x8x1xf32> to vector<2x8x16xf32>
    %69 = arith.mulf %64, %68 : vector<2x8x16xf32>
    "tpu.trace_start"() <{level = 10 : i32, message = "bls,bsd->bld"}> : () -> ()
    %cst_34 = arith.constant dense<0.000000e+00> : vector<2x8x8xf32>
    %70 = tpu.matmul %69, %58, %cst_34 {dimension_numbers = #tpu.dot_dimension_numbers<[2], [1], [1], [2], [0, 0, 0, 1, 1, 2], [0], [0]>} : vector<2x8x16xf32>, vector<2x16x8xf32>, vector<2x8x8xf32> -> vector<2x8x8xf32>
    "tpu.trace_stop"() : () -> ()
    %71 = vector.extract_strided_slice %23 {offsets = [0, 0, 24], sizes = [2, 8, 8], strides = [1, 1, 1]} : vector<2x8x32xf32> to vector<2x8x8xf32>
    %72 = vector.extract_strided_slice %24 {offsets = [0, 0, 24], sizes = [2, 16, 8], strides = [1, 1, 1]} : vector<2x16x32xf32> to vector<2x16x8xf32>
    %73 = vector.extract_strided_slice %25 {offsets = [0, 0, 24], sizes = [2, 16, 8], strides = [1, 1, 1]} : vector<2x16x32xf32> to vector<2x16x8xf32>
    "tpu.trace_start"() <{level = 10 : i32, message = "ble,bse->bls"}> : () -> ()
    %cst_35 = arith.constant dense<0.000000e+00> : vector<2x8x16xf32>
    %74 = tpu.matmul %71, %72, %cst_35 {dimension_numbers = #tpu.dot_dimension_numbers<[2], [2], [1], [1], [0, 0, 0, 1, 1, 1], [0], [0]>} : vector<2x8x8xf32>, vector<2x16x8xf32>, vector<2x8x16xf32> -> vector<2x8x16xf32>
    "tpu.trace_stop"() : () -> ()
    %cst_36 = arith.constant dense<0xFF800000> : vector<2x8xf32>
    %75 = vector.multi_reduction <maximumf>, %74, %cst_36 [2] : vector<2x8x16xf32> to vector<2x8xf32>
    %76 = vector.shape_cast %75 : vector<2x8xf32> to vector<2x8x1xf32>
    %77 = vector.broadcast %76 : vector<2x8x1xf32> to vector<2x8x16xf32>
    %78 = arith.subf %74, %77 : vector<2x8x16xf32>
    %79 = math.exp %78 : vector<2x8x16xf32>
    %cst_37 = arith.constant dense<0.000000e+00> : vector<2x8xf32>
    %80 = vector.multi_reduction <add>, %79, %cst_37 [2] : vector<2x8x16xf32> to vector<2x8xf32>
    %81 = vector.shape_cast %80 : vector<2x8xf32> to vector<2x8x1xf32>
    %82 = tpu.reciprocal %81 {approx = true} : vector<2x8x1xf32> -> vector<2x8x1xf32>
    %83 = vector.broadcast %82 : vector<2x8x1xf32> to vector<2x8x16xf32>
    %84 = arith.mulf %79, %83 : vector<2x8x16xf32>
    "tpu.trace_start"() <{level = 10 : i32, message = "bls,bsd->bld"}> : () -> ()
    %cst_38 = arith.constant dense<0.000000e+00> : vector<2x8x8xf32>
    %85 = tpu.matmul %84, %73, %cst_38 {dimension_numbers = #tpu.dot_dimension_numbers<[2], [1], [1], [2], [0, 0, 0, 1, 1, 2], [0], [0]>} : vector<2x8x16xf32>, vector<2x16x8xf32>, vector<2x8x8xf32> -> vector<2x8x8xf32>
    "tpu.trace_stop"() : () -> ()
    %86 = tpu.concatenate %40, %55, %70, %85 in 2 : vector<2x8x8xf32>, vector<2x8x8xf32>, vector<2x8x8xf32>, vector<2x8x8xf32> -> vector<2x8x32xf32>
    %87 = vector.shape_cast %86 : vector<2x8x32xf32> to vector<16x32xf32>
    %c0_39 = arith.constant 0 : index
    %c0_40 = arith.constant 0 : index
    %88 = vector.load %arg10[%c0_39, %c0_40] : memref<32x32xf32, #tpu.memory_space<vmem>>, vector<32x32xf32>
    %cst_41 = arith.constant dense<0.000000e+00> : vector<16x32xf32>
    %89 = tpu.matmul %87, %88, %cst_41 {dimension_numbers = #tpu.dot_dimension_numbers<[1], [0], [0], [1], [0, 0, 1, 1], [], []>} : vector<16x32xf32>, vector<32x32xf32>, vector<16x32xf32> -> vector<16x32xf32>
    %c0_42 = arith.constant 0 : index
    %c0_43 = arith.constant 0 : index
    %90 = vector.load %arg11[%c0_42, %c0_43] : memref<1x32xf32, #tpu.memory_space<vmem>>, vector<1x32xf32>
    %91 = vector.broadcast %90 : vector<1x32xf32> to vector<16x32xf32>
    %92 = arith.addf %89, %91 : vector<16x32xf32>
    %c0_44 = arith.constant 0 : index
    %c0_45 = arith.constant 0 : index
    %93 = vector.load %arg12[%c0_44, %c0_45] : memref<16x32xf32, #tpu.memory_space<vmem>>, vector<16x32xf32>
    tpu.vector_store %arg12[%c0_44, %c0_45], %92 {strides = array<i32>} : memref<16x32xf32, #tpu.memory_space<vmem>>, vector<16x32xf32>,
    return
  }
  func.func @transform_0(%arg0: i32) -> (i32, i32, i32) {
    %c0_i32 = arith.constant 0 : i32
    %c0_i32_0 = arith.constant 0 : i32
    %c0_i32_1 = arith.constant 0 : i32
    return %arg0, %c0_i32, %c0_i32_0 : i32, i32, i32
  }
  func.func @transform_1(%arg0: i32) -> (i32, i32, i32) {
    %c0_i32 = arith.constant 0 : i32
    %c0_i32_0 = arith.constant 0 : i32
    %c0_i32_1 = arith.constant 0 : i32
    return %arg0, %c0_i32, %c0_i32_0 : i32, i32, i32
  }
  func.func @transform_2(%arg0: i32) -> (i32, i32, i32) {
    %c0_i32 = arith.constant 0 : i32
    %c0_i32_0 = arith.constant 0 : i32
    %c0_i32_1 = arith.constant 0 : i32
    return %arg0, %c0_i32, %c0_i32_0 : i32, i32, i32
  }
  func.func @transform_3(%arg0: i32) -> (i32, i32) {
    %c0_i32 = arith.constant 0 : i32
    %c0_i32_0 = arith.constant 0 : i32
    %c0_i32_1 = arith.constant 0 : i32
    return %c0_i32, %c0_i32_0 : i32, i32
  }
  func.func @transform_4(%arg0: i32) -> (i32, i32) {
    %c0_i32 = arith.constant 0 : i32
    %c0_i32_0 = arith.constant 0 : i32
    %c0_i32_1 = arith.constant 0 : i32
    return %c0_i32, %c0_i32_0 : i32, i32
  }
  func.func @transform_5(%arg0: i32) -> (i32, i32) {
    %c0_i32 = arith.constant 0 : i32
    %c0_i32_0 = arith.constant 0 : i32
    %c0_i32_1 = arith.constant 0 : i32
    return %c0_i32, %c0_i32_0 : i32, i32
  }
  func.func @transform_6(%arg0: i32) -> (i32, i32) {
    %c0_i32 = arith.constant 0 : i32
    %c0_i32_0 = arith.constant 0 : i32
    %c0_i32_1 = arith.constant 0 : i32
    return %c0_i32, %c0_i32_0 : i32, i32
  }
  func.func @transform_7(%arg0: i32) -> (i32, i32) {
    %c0_i32 = arith.constant 0 : i32
    %c0_i32_0 = arith.constant 0 : i32
    %c0_i32_1 = arith.constant 0 : i32
    return %c0_i32, %c0_i32_0 : i32, i32
  }
  func.func @transform_8(%arg0: i32) -> (i32, i32) {
    %c0_i32 = arith.constant 0 : i32
    %c0_i32_0 = arith.constant 0 : i32
    %c0_i32_1 = arith.constant 0 : i32
    return %c0_i32, %c0_i32_0 : i32, i32
  }
  func.func @transform_9(%arg0: i32) -> (i32, i32) {
    %c0_i32 = arith.constant 0 : i32
    %c0_i32_0 = arith.constant 0 : i32
    %c0_i32_1 = arith.constant 0 : i32
    return %c0_i32, %c0_i32_0 : i32, i32
  }
  func.func @transform_10(%arg0: i32) -> (i32, i32) {
    %c0_i32 = arith.constant 0 : i32
    %c0_i32_0 = arith.constant 0 : i32
    %c0_i32_1 = arith.constant 0 : i32
    return %c0_i32, %c0_i32_0 : i32, i32
  }
  func.func @transform_11(%arg0: i32) -> (i32, i32) {
    %c0_i32 = arith.constant 0 : i32
    %c0_i32_0 = arith.constant 0 : i32
    return %arg0, %c0_i32 : i32, i32
  }
}

</mosaic_0001>

<bundles_post_ra>
// kernel: attention_layer.1
= control target key start
LH: loop header
LB: loop body
LE: loop exit
PB: predicated region body
PF: predicated region fallthrough
CT: control target
= control target key end

     0   :  { %16 = vsyncpa [#allocation3], 0  ;;  %s2840_s0 = inlined_call_operand.hbm [shape: f32[2,8,32], index: 0, kind: input, shape index: {}]   ;;  %s2841_s1 = inlined_call_operand.hbm [shape: f32[2,16,32], index: 1, kind: input, shape index: {}]   ;;  %s2842_s2 = inlined_call_operand.hbm [shape: f32[2,16,32], index: 2, kind: input, shape index: {}]   ;;  %s2843_s3 = inlined_call_operand.hbm [shape: f32[32,32], index: 3, kind: input, shape index: {}]   ;;  %s2844_s4 = inlined_call_operand.vmem [shape: f32[1,32], index: 4, kind: input, shape index: {}]   ;;  %s2845_s5 = inlined_call_operand.hbm [shape: f32[32,32], index: 5, kind: input, shape index: {}]   ;;  %s2846_s6 = inlined_call_operand.vmem [shape: f32[1,32], index: 6, kind: input, shape index: {}]   ;;  %s2847_s7 = inlined_call_operand.hbm [shape: f32[32,32], index: 7, kind: input, shape index: {}]   ;;  %s2848_s8 = inlined_call_operand.vmem [shape: f32[1,32], index: 8, kind: input, shape index: {}]   ;;  %s2849_s9 = inlined_call_operand.hbm [shape: f32[32,32], index: 9, kind: input, shape index: {}]   ;;  %s2850_s10 = inlined_call_operand.vmem [shape: f32[1,32], index: 10, kind: input, shape index: {}]   ;;  %s2851_s11 = inlined_call_operand.hbm [shape: f32[16,32], index: 11, kind: output, shape index: {}]  }
   0x1   :  { %17 = vsyncpa [#allocation6], 0 }
   0x2   :  { %18 = vsyncpa [#allocation9], 0 }
   0x3   :  { %19 = vsyncpa [#allocation12], 0 }
   0x4   :  { %20 = vsyncpa [#allocation4], 0  ;;  %s2469_s17 = smov [#allocation5]   ;;  %s2470_s19 = smov [#allocation8]  }
   0x5   :  { %s38_s18 = sshll.u32 %s2469_s17, 4  ;;  %s62_s20 = sshll.u32 %s2470_s19, 4  ;;  %s39_s18 = int_to_ptr.vmem [resolvable:$true] %s38_s18  ;;  %s63_s20 = int_to_ptr.vmem [resolvable:$true] %s62_s20 }
   0x6   :  { %s2307_s21 = scalar_lea.vmem %s39_s18, 512  ;;  %p2312_p1 = scmp.lt.s32.totalorder %s39_s18, %s39_s18 }
   0x7   :  { %p2308_p0 = scmp.ne.s32.totalorder %s39_s18, %s2307_s21  ;;  %p2313_p2 = scmp.lt.s32.totalorder %s2307_s21, %s2307_s21 }
   0x9   :  { %p2314_p3 = por %p2313_p2, %p2312_p1 }
   0xb   :  { %p2315_p4 = pnand %p2314_p3, %p2308_p0 }
   0xd   :  { %2318 = shalt.err (!%p2315_p4)
}
   0xe   :  { %s2471_s22 = smov 128   ;;  %s2472_s23 = smov 8  }
   0xf   :  { %44 = dma.hbm_to_vmem [thread:$0]  %s2841_s1, 512, %s39_s18, [#allocation6], %s2471_s22, %s2471_s22, %s2472_s23  }
  0x10   :  { %s2327_s26 = scalar_lea.vmem %s63_s20, 512  ;;  %p2332_p6 = scmp.lt.s32.totalorder %s63_s20, %s63_s20 }
  0x11   :  { %p2328_p5 = scmp.ne.s32.totalorder %s63_s20, %s2327_s26  ;;  %p2333_p7 = scmp.lt.s32.totalorder %s2327_s26, %s2327_s26 }
  0x13   :  { %p2334_p8 = por %p2333_p7, %p2332_p6 }
  0x15   :  { %p2335_p9 = pnand %p2334_p8, %p2328_p5 }
  0x17   :  { %2338 = shalt.err (!%p2335_p9)
}
  0x18   :  { %68 = dma.hbm_to_vmem [thread:$0]  %s2843_s3, 512, %s63_s20, [#allocation9], %s2471_s22, %s2471_s22, %s2472_s23  }
  0x19   :  { %s2473_s29 = smov [#allocation11]   ;;  %s2474_s12 = smov [#allocation2]  }
  0x1a   :  { %s90_s30 = sshll.u32 %s2473_s29, 4  ;;  %s26_s13 = sshll.u32 %s2474_s12, 4  ;;  %s91_s30 = int_to_ptr.vmem [resolvable:$true] %s90_s30  ;;  %s27_s13 = int_to_ptr.vmem [resolvable:$true] %s26_s13 }
  0x1b   :  { %s2347_s1 = scalar_lea.vmem %s91_s30, 512  ;;  %p2352_p11 = scmp.lt.s32.totalorder %s91_s30, %s91_s30 }
  0x1c   :  { %p2348_p10 = scmp.ne.s32.totalorder %s91_s30, %s2347_s1  ;;  %p2353_p12 = scmp.lt.s32.totalorder %s2347_s1, %s2347_s1 }
  0x1e   :  { %p2354_p13 = por %p2353_p12, %p2352_p11 }
  0x20   :  { %p2355_p0 = pnand %p2354_p13, %p2348_p10 }
  0x22   :  { %2358 = shalt.err (!%p2355_p0)
}
  0x23   :  { %96 = dma.hbm_to_vmem [thread:$0]  %s2847_s7, 512, %s91_s30, [#allocation12], %s2471_s22, %s2471_s22, %s2472_s23  }
  0x24   :  { %s2367_s3 = scalar_lea.vmem %s27_s13, 256  ;;  %p2372_p2 = scmp.lt.s32.totalorder %s27_s13, %s27_s13 }
  0x25   :  { %p2368_p1 = scmp.ne.s32.totalorder %s27_s13, %s2367_s3  ;;  %p2373_p3 = scmp.lt.s32.totalorder %s2367_s3, %s2367_s3 }
  0x27   :  { %p2374_p4 = por %p2373_p3, %p2372_p2 }
  0x29   :  { %p2375_p5 = pnand %p2374_p4, %p2368_p1 }
  0x2b   :  { %2378 = shalt.err (!%p2375_p5)
}
  0x2c   :  { %32 = dma.hbm_to_vmem [thread:$0]  %s2840_s0, 256, %s27_s13, [#allocation3], %s2471_s22, %s2471_s22, %s2472_s23  }
  0x2d   :  { %s2475_s18 = smov [#allocation7]   ;;  %s2476_s20 = smov [#allocation10]  }
  0x2e   :  { %s50_s19 = sshll.u32 %s2475_s18, 4  ;;  %s76_s21 = sshll.u32 %s2476_s20, 4  ;;  %s51_s19 = int_to_ptr.vmem [resolvable:$true] %s50_s19  ;;  %s77_s21 = int_to_ptr.vmem [resolvable:$true] %s76_s21 }
  0x2f   :  { %s2387_s7 = scalar_lea.vmem %s51_s19, 512  ;;  %p2392_p7 = scmp.lt.s32.totalorder %s51_s19, %s51_s19 }
  0x30   :  { %p2388_p6 = scmp.ne.s32.totalorder %s51_s19, %s2387_s7  ;;  %p2393_p8 = scmp.lt.s32.totalorder %s2387_s7, %s2387_s7 }
  0x32   :  { %p2394_p9 = por %p2393_p8, %p2392_p7 }
  0x34   :  { %p2395_p10 = pnand %p2394_p9, %p2388_p6 }
  0x36   :  { %2398 = shalt.err (!%p2395_p10)
}
  0x37   :  { %56 = dma.hbm_to_vmem [thread:$0]  %s2842_s2, 512, %s51_s19, [#allocation6], %s2471_s22, %s2471_s22, %s2472_s23  }
  0x38   :  { %s2407_s0 = scalar_lea.vmem %s77_s21, 512  ;;  %p2412_p12 = scmp.lt.s32.totalorder %s77_s21, %s77_s21 }
  0x39   :  { %p2408_p11 = scmp.ne.s32.totalorder %s77_s21, %s2407_s0  ;;  %p2413_p13 = scmp.lt.s32.totalorder %s2407_s0, %s2407_s0 }
  0x3b   :  { %p2414_p0 = por %p2413_p13, %p2412_p12 }
  0x3d   :  { %p2415_p1 = pnand %p2414_p0, %p2408_p11 }
  0x3f   :  { %2418 = shalt.err (!%p2415_p1)
}
  0x40   :  { %82 = dma.hbm_to_vmem [thread:$0]  %s2845_s5, 512, %s77_s21, [#allocation9], %s2471_s22, %s2471_s22, %s2472_s23  }
  0x41   :  { %s2477_s28 = smov [#allocation13]  }
  0x42   :  { %s104_s29 = sshll.u32 %s2477_s28, 4  ;;  %s105_s29 = int_to_ptr.vmem [resolvable:$true] %s104_s29 }
  0x43   :  { %s2427_s30 = scalar_lea.vmem %s105_s29, 512  ;;  %p2432_p3 = scmp.lt.s32.totalorder %s105_s29, %s105_s29 }
  0x44   :  { %p2428_p2 = scmp.ne.s32.totalorder %s105_s29, %s2427_s30  ;;  %p2433_p4 = scmp.lt.s32.totalorder %s2427_s30, %s2427_s30 }
  0x46   :  { %p2434_p5 = por %p2433_p4, %p2432_p3 }
  0x48   :  { %p2435_p6 = pnand %p2434_p5, %p2428_p2 }
  0x4a   :  { %2438 = shalt.err (!%p2435_p6)
}
  0x4b   :  { %110 = dma.hbm_to_vmem [thread:$0]  %s2849_s9, 512, %s105_s29, [#allocation12], %s2471_s22, %s2471_s22, %s2472_s23  }
  0x4c   :  { %2459 = dma.done.wait [#allocation3], 256  }
  0x4d   :  { %2460 = vsyncadd [#allocation3], 4294967040 }
  0x4e   :  { %2461 = dma.done.wait [#allocation6], 1024  }
  0x4f   :  { %2462 = vsyncadd [#allocation6], 4294966272 }
  0x50   :  { %2463 = dma.done.wait [#allocation9], 1024  }
  0x51   :  { %2464 = vsyncadd [#allocation9], 4294966272 }
  0x52   :  { %2465 = dma.done.wait [#allocation12], 1024  }
  0x53   :  { %2466 = vsyncadd [#allocation12], 4294966272  ;;  %v242_v0 = vld [vmem:[#allocation10 + $0x18] sm:$0xff]  ;;  %v241_v2 = vld [vmem:[#allocation10 + $0x10] sm:$0xff]  ;;  %vm155_vm0 = vcmask 261120   ;;  %v2478_v18 = vmov 0.0  }
  0x54   :  { %v147_v1 = vld [vmem:[#allocation8 + $0x18] sm:$0xff]  ;;  %2099 = vmatprep.subr.mxu1 %v242_v0  ;;  %v146_v3 = vld [vmem:[#allocation8 + $0x10] sm:$0xff]  ;;  %v240_v4 = vld [vmem:[#allocation10 + $0x8] sm:$0xff]  ;;  %vm2479_vm1 = vmmov 0   ;;  %vm455_vm2 = vcmask 64512   ;;  %vm614_vm3 = vcmask 130048  }
  0x55   :  { %2088 = vmatprep.subr.mxu0 %v147_v1  ;;  %2100 = vmatpush3.msra.mxu1 %v242_v0  ;;  %v145_v5 = vld [vmem:[#allocation8 + $0x8] sm:$0xff]  ;;  %v239_v6 = vld [vmem:[#allocation10] sm:$0xff]  ;;  %v134_v10 = vld [vmem:[#allocation2] sm:$0xff]  ;;  %s2482_s15 = smov 104   ;;  %s2483_s3 = smov 16   ;;  %vm1847_vm4 = vcmask 195584  }
  0x56   :  { %2089 = vmatpush3.msra.mxu0 %v147_v1  ;;  %2101 = vmatprep.subr.mxu1 %v241_v2  ;;  %v136_v7 = vld [vmem:[#allocation5] sm:$0xff]  ;;  %v137_v9 = vld [vmem:[#allocation5 + $0x8] sm:$0xff]  ;;  %v138_v11 = vld [vmem:[#allocation5 + $0x10] sm:$0xff]  ;;  %s2484_s16 = smov 24   ;;  %s2485_s19 = smov [#allocation14]  }
  0x57   :  { %2090 = vmatprep.subr.mxu0 %v146_v3  ;;  %2102 = vmatpush3.msra.mxu1 %v241_v2  ;;  %v144_v8 = vld [vmem:[#allocation8] sm:$0xff]  ;;  %v135_v12 = vld [vmem:[#allocation2 + $0x8] sm:$0xff]  ;;  %v349_v15 = vld [vmem:[#allocation11 + $0x10] sm:$0xff]  ;;  %s1949_s20 = sshll.u32 %s2485_s19, 4  ;;  %s1950_s20 = int_to_ptr.vmem [resolvable:$true] %s1949_s20 }
  0x58   :  { %2091 = vmatpush3.msra.mxu0 %v146_v3  ;;  %2103 = vmatprep.subr.mxu1 %v240_v4  ;;  %v350_v13 = vld [vmem:[#allocation11 + $0x18] sm:$0xff]  ;;  %v348_v16 = vld [vmem:[#allocation11 + $0x8] sm:$0xff]  ;;  %v347_v17 = vld [vmem:[#allocation11] sm:$0xff]  ;;  %s2439_s21 = scalar_lea.vmem %s1950_s20, 256  ;;  %p2444_p8 = scmp.lt.s32.totalorder %s1950_s20, %s1950_s20 }
  0x59   :  { %2092 = vmatprep.subr.mxu0 %v145_v5  ;;  %2104 = vmatpush3.msra.mxu1 %v240_v4  ;;  %v139_v14 = vld [vmem:[#allocation5 + $0x18] sm:$0xff]  ;;  %v140_v19 = vld [vmem:[#allocation7] sm:$0xff]  ;;  %v141_v20 = vld [vmem:[#allocation7 + $0x8] sm:$0xff]  ;;  %p2440_p7 = scmp.ne.s32.totalorder %s1950_s20, %s2439_s21  ;;  %p2445_p9 = scmp.lt.s32.totalorder %s2439_s21, %s2439_s21 }
  0x5a   :  { %2093 = vmatpush3.msra.mxu0 %v145_v5  ;;  %2105 = vmatprep.subr.mxu1 %v239_v6  ;;  %v142_v21 = vld [vmem:[#allocation7 + $0x10] sm:$0xff]  ;;  %v143_v22 = vld [vmem:[#allocation7 + $0x18] sm:$0xff] }
  0x5b   :  { %2107 = vmatprep.mubr.msk.f32.mxu1 %vm155_vm0, %v136_v7  ;;  %2106 = vmatpush3.msra.mxu1 %v239_v6  ;;  %v1967_v23 = vld [vmem:[%s2846_s6] ss:$0 sm:$0xff]  ;;  %s2480_s6 = smov 120   ;;  %p2446_p10 = por %p2445_p9, %p2444_p8 }
  0x5c   :  { %2094 = vmatprep.subr.mxu0 %v144_v8  ;;  %2108 = vmatmul.mubr.msk.f32.vlgmr.msra.gmra.mxu1 %vm155_vm0, %v137_v9  ;;  %v1964_v27 = vld [vmem:[%s2844_s4] ss:$0 sm:$0xff] }
  0x5d   :  { %2095 = vmatpush3.msra.mxu0 %v144_v8  ;;  %2096 = vmatprep.mubr.msk.f32.mxu0 %vm155_vm0, %v134_v10  ;;  %v1972_v39 = vld [vmem:[%s2848_s8] ss:$0 sm:$0xff]  ;;  %s2481_s8 = smov 112   ;;  %p2447_p11 = pnand %p2446_p10, %p2440_p7 }
  0x5e   :  { %2110 = vmatprep.mubr.msk.f32.mxu1 %vm155_vm0, %v138_v11  ;;  %2097 = vmatmul.mubr.msk.f32.vlgmr.msra.gmra.mxu0 %vm155_vm0, %v135_v12 }
  0x5f   :  { %2113 = vmatprep.subr.mxu0 %v350_v13  ;;  %2127 = vmatprep.subr.mxu1 %v2478_v18 }
  0x60   :  { %2114 = vmatpush3.msra.mxu0 %v350_v13  ;;  %2111 = vmatmul.mubr.msk.f32.gmra.mxu1 %vm155_vm0, %v139_v14 }
  0x61   :  { %2115 = vmatprep.subr.mxu0 %v349_v15  ;;  %2121 = vmatprep.mubr.msk.f32.mxu0 %vm155_vm0, %v140_v19 }
  0x62   :  { %2116 = vmatpush3.msra.mxu0 %v349_v15  ;;  %2131 = vmatprep.mubr.msk.f32.mxu1 %vm2479_vm1, %v2478_v18 }
  0x63   :  { %2117 = vmatprep.subr.mxu0 %v348_v16 }
  0x64   :  { %2118 = vmatpush3.msra.mxu0 %v348_v16 }
  0x65   :  { %2119 = vmatprep.subr.mxu0 %v347_v17 }
  0x66   :  { %2120 = vmatpush3.msra.mxu0 %v347_v17 }
  0x67   :  { %2122 = vmatmul.mubr.msk.f32.vlgmr.msra.gmra.mxu0 %vm155_vm0, %v141_v20  ;;  %2134 = vmatprep.subr.mxu0 %v2478_v18 }
  0x68   :  { %2124 = vmatprep.mubr.msk.f32.mxu0 %vm155_vm0, %v142_v21 }
  0x6b   :  { %2125 = vmatmul.mubr.msk.f32.gmra.mxu0 %vm155_vm0, %v143_v22 }
  0x6c   :  { %2138 = vmatprep.mubr.msk.f32.mxu0 %vm2479_vm1, %v2478_v18 }
 0x11c   :  { %v2109_v24 = vpop.f32.mrf.mxu1 }
 0x11d   :  { %v2607_v25 = vadd.f32 %v2109_v24, %v1967_v23 }
 0x11e   :  { %v2098_v26 = vpop.f32.mrf.mxu0  ;;  %v328_v28 = vpop.f32.mrf.mxu1 }
 0x11f   :  { %v2612_v29 = vadd.f32 %v1967_v23, %v328_v28  ;;  %2128 = vmatpush3.xpose.msk.msra.mxu1 %vm455_vm2, %v2607_v25  ;;  %v234_v35 = vadd.f32 %v2098_v26, %v1964_v27 }
 0x120   :  { %v228_v30 = vpop.f32.mrf.mxu0  ;;  %v2112_v31 = vpop.f32.mrf.mxu1  ;;  %2129 = vmatprep.subr.mxu1 %v2478_v18 }
 0x121   :  { %v229_v32 = vadd.f32 %v1964_v27, %v228_v30  ;;  %v2617_v33 = vadd.f32 %v2112_v31, %v1967_v23  ;;  %785 = vrot.lane.b32.xlu1 %v2612_v29, %s2480_s6  ;;  %v2639_v38 = vmul.f32 0.35355338, %v234_v35 }
 0x122   :  { %v338_v34 = vpop.f32.mrf.mxu1 }
 0x123   :  { %2130 = vmatpush3.xpose.msk.msra.mxu1 %vm455_vm2, %v2612_v29  ;;  %2135 = vmatpush3.xpose.msk.msra.mxu0 %vm455_vm2, %v2617_v33  ;;  %v2625_v36 = vmul.f32 0.35355338, %v229_v32  ;;  %v2629_v37 = vadd.f32 %v1967_v23, %v338_v34 }
 0x124   :  { %2136 = vmatprep.subr.mxu0 %v2478_v18  ;;  %2141 = vmatprep.subr.mxu1 %v2478_v18 }
 0x125   :  { %869 = vrot.lane.b32.xlu1 %v2617_v33, %s2480_s6 }
 0x126   :  { %2132 = vmatmul.mubr.msk.f32.vlgmr.msra.gmra.mxu1 %vm455_vm2, %v2625_v36 }
 0x127   :  { %2137 = vmatpush3.xpose.msk.msra.mxu0 %vm455_vm2, %v2629_v37  ;;  %2145 = vmatprep.mubr.msk.f32.mxu1 %vm2479_vm1, %v2478_v18  ;;  %v2123_v40 = vpop.f32.mrf.mxu0 }
 0x128   :  { %2155 = vmatprep.subr.mxu0 %v2478_v18  ;;  %v2651_v41 = vadd.f32 %v2123_v40, %v1972_v39 }
 0x129   :  { %783 = vrot.lane.b32.xlu1 %v2625_v36, %s2480_s6  ;;  %v436_v42 = vpop.f32.mrf.mxu0 }
 0x12a   :  { %2139 = vmatmul.mubr.msk.f32.vlgmr.msra.gmra.mxu0 %vm455_vm2, %v2639_v38  ;;  %v2653_v43 = vadd.f32 %v1972_v39, %v436_v42  ;;  %2142 = vmatpush3.msra.mxu1 %v2651_v41 }
 0x12b   :  { %2159 = vmatprep.mubr.msk.f32.mxu0 %vm2479_vm1, %v2478_v18  ;;  %v2126_v44 = vpop.f32.mrf.mxu0  ;;  %2143 = vmatprep.subr.mxu1 %v2478_v18 }
 0x12c   :  { %v2657_v45 = vadd.f32 %v2126_v44, %v1972_v39  ;;  %2144 = vmatpush3.msra.mxu1 %v2653_v43 }
 0x12d   :  { %2148 = vmatprep.subr.mxu1 %v2478_v18  ;;  %v446_v48 = vpop.f32.mrf.mxu0 }
 0x12e   :  { %v2679_v8 = vadd.f32 %v1972_v39, %v446_v48 }
 0x193   :  { %v786_v55 = vpop.permute.xlu1 %785 }
 0x197   :  { %v870_v61 = vpop.permute.xlu1 %869 }
 0x19b   :  { %v784_v62 = vpop.permute.xlu1 %783 }
 0x1e6   :  { %v531_v46 = vpop.f32.mrf.mxu1 }
 0x1e7   :  { %v615_v47 = vsel %vm614_vm3, %v531_v46, -inf }
 0x1e8   :  { %616 = vmax.xlane.f32.xlu0 %v615_v47  ;;  %v2133_v49 = vpop.f32.mrf.mxu1 }
 0x1ea   :  { %v610_v50 = vpop.f32.mrf.mxu0 }
 0x1eb   :  { %v618_v51 = vsel %vm614_vm3, %v610_v50, -inf }
 0x1ec   :  { %v2140_v52 = vpop.f32.mrf.mxu0  ;;  %619 = vmax.xlane.f32.xlu0 %v618_v51 }
 0x202   :  { %787 = vrot.lane.b32.xlu0 %v2607_v25, %s2480_s6 }
 0x206   :  { %867 = vrot.lane.b32.xlu0 %v2629_v37, %s2480_s6 }
 0x271   :  { %v617_v53 = vpop.xlane.xlu0 %616 }
 0x272   :  { %v621_v54 = vsub.f32 %v531_v46, %v617_v53 }
 0x274   :  { %v623_v56 = vmul.f32 1.442695, %v621_v54 }
 0x275   :  { %v620_v57 = vpop.xlane.xlu0 %619 }
 0x276   :  { %2267 = vpow2.f32 %v623_v56  ;;  %v622_v58 = vsub.f32 %v610_v50, %v620_v57 }
 0x278   :  { %v625_v59 = vmul.f32 1.442695, %v622_v58 }
 0x279   :  { %v788_v60 = vpop.permute.xlu0 %787 }
 0x27a   :  { %2269 = vpow2.f32 %v625_v59  ;;  %2156 = vmatpush3.xpose.msk.msra.mxu0 %vm455_vm2, %v788_v60 }
 0x27b   :  { %2157 = vmatprep.subr.mxu0 %v2478_v18 }
 0x27d   :  { %v868_v10 = vpop.permute.xlu0 %867 }
 0x27e   :  { %2158 = vmatpush3.xpose.msk.msra.mxu0 %vm455_vm2, %v786_v55 }
 0x27f   :  { %2183 = vmatprep.subr.mxu0 %v2478_v18 }
 0x281   :  { %2160 = vmatmul.mubr.msk.f32.vlgmr.msra.gmra.mxu0 %vm455_vm2, %v784_v62 }
 0x282   :  { %2187 = vmatprep.mubr.msk.f32.mxu0 %vm2479_vm1, %v2478_v18 }
 0x283   :  { %v2268_v63 = vpop.eup %2267 }
 0x284   :  { %v627_v0 = vsel %vm614_vm3, %v2268_v63, 0.0 }
 0x285   :  { %628 = vadd.xlane.f32.xlu1 %v627_v0 }
 0x287   :  { %v2270_v1 = vpop.eup %2269 }
 0x288   :  { %v630_v2 = vsel %vm614_vm3, %v2270_v1, 0.0 }
 0x289   :  { %631 = vadd.xlane.f32.xlu1 %v630_v2 }
 0x29a   :  { %865 = vrot.lane.b32.xlu1 %v2639_v38, %s2480_s6 }
 0x30e   :  { %v629_v3 = vpop.xlane.xlu1 %628 }
 0x30f   :  { %2271 = vrcp.f32 %v629_v3 }
 0x312   :  { %v632_v4 = vpop.xlane.xlu1 %631 }
 0x313   :  { %2273 = vrcp.f32 %v632_v4 }
 0x316   :  { %v866_v11 = vpop.permute.xlu1 %865 }
 0x31c   :  { %v2272_v5 = vpop.eup %2271 }
 0x31d   :  { %v635_v6 = vmul.f32 %v2272_v5, %v2268_v63 }
 0x31f   :  { %2146 = vmatmul.mubr.msk.f32.vlgmr.msra.gmra.mxu1 %vm614_vm3, %v635_v6 }
 0x320   :  { %v2274_v7 = vpop.eup %2273  ;;  %2149 = vmatpush3.msra.mxu1 %v2657_v45  ;;  %2152 = vmatprep.mubr.msk.f32.mxu1 %vm2479_vm1, %v2478_v18 }
 0x321   :  { %2150 = vmatprep.subr.mxu1 %v2478_v18  ;;  %v636_v9 = vmul.f32 %v2274_v7, %v2270_v1 }
 0x322   :  { %2151 = vmatpush3.msra.mxu1 %v2679_v8 }
 0x323   :  { %2162 = vmatprep.subr.mxu1 %v2478_v18  ;;  %2153 = vmatmul.mubr.msk.f32.vlgmr.msra.gmra.mxu1 %vm614_vm3, %v636_v9 }
 0x324   :  { %2163 = vmatpush3.xpose.msk.msra.mxu1 %vm455_vm2, %v870_v61  ;;  %2166 = vmatprep.mubr.msk.f32.mxu1 %vm2479_vm1, %v2478_v18 }
 0x325   :  { %2164 = vmatprep.subr.mxu1 %v2478_v18 }
 0x328   :  { %2165 = vmatpush3.xpose.msk.msra.mxu1 %vm455_vm2, %v868_v10 }
 0x329   :  { %2169 = vmatprep.subr.mxu1 %v2478_v18 }
 0x32b   :  { %2167 = vmatmul.mubr.msk.f32.vlgmr.msra.gmra.mxu1 %vm455_vm2, %v866_v11 }
 0x32c   :  { %2173 = vmatprep.mubr.msk.f32.mxu1 %vm2479_vm1, %v2478_v18 }
 0x341   :  { %v861_v12 = vpop.f32.mrf.mxu0 }
 0x342   :  { %v947_v13 = vsel %vm614_vm3, %v861_v12, -inf }
 0x343   :  { %948 = vmax.xlane.f32.xlu0 %v947_v13  ;;  %v2161_v14 = vpop.f32.mrf.mxu0 }
 0x3cc   :  { %v949_v15 = vpop.xlane.xlu0 %948 }
 0x3cd   :  { %v953_v16 = vsub.f32 %v861_v12, %v949_v15 }
 0x3cf   :  { %v955_v17 = vmul.f32 1.442695, %v953_v16 }
 0x3d1   :  { %2275 = vpow2.f32 %v955_v17 }
 0x3de   :  { %v2276_v19 = vpop.eup %2275 }
 0x3df   :  { %v2698_v20 = vpop.f32.mrf.mxu1  ;;  %v959_v21 = vsel %vm614_vm3, %v2276_v19, 0.0 }
 0x3e0   :  { %960 = vadd.xlane.f32.xlu0 %v959_v21 }
 0x3e1   :  { %v2147_v22 = vpop.f32.mrf.mxu1 }
 0x3e3   :  { %v2701_v23 = vpop.f32.mrf.mxu1 }
 0x3e5   :  { %v2154_v24 = vpop.f32.mrf.mxu1 }
 0x3eb   :  { %v943_v26 = vpop.f32.mrf.mxu1 }
 0x3ec   :  { %v950_v27 = vsel %vm614_vm3, %v943_v26, -inf }
 0x3ed   :  { %951 = vmax.xlane.f32.xlu1 %v950_v27  ;;  %v2168_v28 = vpop.f32.mrf.mxu1 }
 0x3f6   :  { %973 = vrot.lane.b32.xlu0 %v2651_v41, %s2480_s6 }
 0x3fa   :  { %1135 = vrot.lane.b32.xlu0 %v2607_v25, %s2481_s8 }
 0x3fe   :  { %971 = vrot.lane.b32.xlu1 %v2653_v43, %s2480_s6 }
 0x402   :  { %1054 = vrot.lane.b32.xlu1 %v2657_v45, %s2480_s6 }
 0x406   :  { %1052 = vrot.lane.b32.xlu1 %v2679_v8, %s2480_s6 }
 0x40a   :  { %1217 = vrot.lane.b32.xlu1 %v2617_v33, %s2481_s8 }
 0x40e   :  { %1215 = vrot.lane.b32.xlu1 %v2629_v37, %s2481_s8 }
 0x412   :  { %1213 = vrot.lane.b32.xlu1 %v2639_v38, %s2481_s8 }
 0x469   :  { %v961_v30 = vpop.xlane.xlu0 %960 }
 0x46a   :  { %2277 = vrcp.f32 %v961_v30 }
 0x46d   :  { %v974_v31 = vpop.permute.xlu0 %973 }
 0x46e   :  { %2170 = vmatpush3.msra.mxu1 %v974_v31 }
 0x46f   :  { %2171 = vmatprep.subr.mxu1 %v2478_v18 }
 0x471   :  { %v1136_v32 = vpop.permute.xlu0 %1135 }
 0x472   :  { %2184 = vmatpush3.xpose.msk.msra.mxu0 %vm455_vm2, %v1136_v32 }
 0x473   :  { %2185 = vmatprep.subr.mxu0 %v2478_v18 }
 0x476   :  { %v952_v34 = vpop.xlane.xlu1 %951 }
 0x477   :  { %v2278_v35 = vpop.eup %2277  ;;  %v954_v39 = vsub.f32 %v943_v26, %v952_v34 }
 0x478   :  { %v967_v40 = vmul.f32 %v2278_v35, %v2276_v19 }
 0x479   :  { %v957_v42 = vmul.f32 1.442695, %v954_v39 }
 0x47a   :  { %v972_v44 = vpop.permute.xlu1 %971 }
 0x47b   :  { %2279 = vpow2.f32 %v957_v42  ;;  %2172 = vmatpush3.msra.mxu1 %v972_v44 }
 0x47c   :  { %2174 = vmatmul.mubr.msk.f32.vlgmr.msra.gmra.mxu1 %vm614_vm3, %v967_v40  ;;  %2176 = vmatprep.subr.mxu1 %v2478_v18 }
 0x47d   :  { %2180 = vmatprep.mubr.msk.f32.mxu1 %vm2479_vm1, %v2478_v18 }
 0x47e   :  { %v1055_v46 = vpop.permute.xlu1 %1054 }
 0x47f   :  { %2177 = vmatpush3.msra.mxu1 %v1055_v46 }
 0x480   :  { %2178 = vmatprep.subr.mxu1 %v2478_v18 }
 0x482   :  { %v1053_v47 = vpop.permute.xlu1 %1052 }
 0x483   :  { %2179 = vmatpush3.msra.mxu1 %v1053_v47 }
 0x484   :  { %2190 = vmatprep.subr.mxu1 %v2478_v18 }
 0x486   :  { %v1218_v53 = vpop.permute.xlu1 %1217 }
 0x488   :  { %v2280_v48 = vpop.eup %2279 }
 0x489   :  { %v962_v49 = vsel %vm614_vm3, %v2280_v48, 0.0 }
 0x48a   :  { %963 = vadd.xlane.f32.xlu0 %v962_v49  ;;  %v1216_v56 = vpop.permute.xlu1 %1215 }
 0x48e   :  { %v1214_v57 = vpop.permute.xlu1 %1213 }
 0x4a0   :  { %1133 = vrot.lane.b32.xlu0 %v2612_v29, %s2481_s8 }
 0x4a4   :  { %1131 = vrot.lane.b32.xlu0 %v2625_v36, %s2481_s8 }
 0x513   :  { %v964_v50 = vpop.xlane.xlu0 %963 }
 0x514   :  { %2281 = vrcp.f32 %v964_v50 }
 0x517   :  { %v1134_v51 = vpop.permute.xlu0 %1133 }
 0x518   :  { %2186 = vmatpush3.xpose.msk.msra.mxu0 %vm455_vm2, %v1134_v51 }
 0x519   :  { %2197 = vmatprep.subr.mxu0 %v2478_v18 }
 0x51b   :  { %v1132_v52 = vpop.permute.xlu0 %1131 }
 0x51c   :  { %2188 = vmatmul.mubr.msk.f32.vlgmr.msra.gmra.mxu0 %vm455_vm2, %v1132_v52 }
 0x51d   :  { %2201 = vmatprep.mubr.msk.f32.mxu0 %vm2479_vm1, %v2478_v18 }
 0x521   :  { %v2282_v54 = vpop.eup %2281 }
 0x522   :  { %v968_v55 = vmul.f32 %v2282_v54, %v2280_v48 }
 0x524   :  { %2181 = vmatmul.mubr.msk.f32.vlgmr.msra.gmra.mxu1 %vm614_vm3, %v968_v55 }
 0x525   :  { %2191 = vmatpush3.xpose.msk.msra.mxu1 %vm455_vm2, %v1218_v53  ;;  %2194 = vmatprep.mubr.msk.f32.mxu1 %vm2479_vm1, %v2478_v18 }
 0x526   :  { %2192 = vmatprep.subr.mxu1 %v2478_v18 }
 0x529   :  { %2193 = vmatpush3.xpose.msk.msra.mxu1 %vm455_vm2, %v1216_v56 }
 0x52a   :  { %2204 = vmatprep.subr.mxu1 %v2478_v18 }
 0x52c   :  { %2195 = vmatmul.mubr.msk.f32.vlgmr.msra.gmra.mxu1 %vm455_vm2, %v1214_v57 }
 0x52d   :  { %2208 = vmatprep.mubr.msk.f32.mxu1 %vm2479_vm1, %v2478_v18 }
 0x53c   :  { %v2749_v58 = vpop.f32.mrf.mxu1 }
 0x53e   :  { %v2175_v59 = vpop.f32.mrf.mxu1 }
 0x5dc   :  { %v1209_v60 = vpop.f32.mrf.mxu0 }
 0x5dd   :  { %v1295_v61 = vsel %vm614_vm3, %v1209_v60, -inf }
 0x5de   :  { %1296 = vmax.xlane.f32.xlu0 %v1295_v61  ;;  %v2189_v62 = vpop.f32.mrf.mxu0 }
 0x5e4   :  { %v2752_v63 = vpop.f32.mrf.mxu1 }
 0x5e6   :  { %v2182_v0 = vpop.f32.mrf.mxu1 }
 0x5ec   :  { %v1291_v1 = vpop.f32.mrf.mxu1 }
 0x5ed   :  { %v1298_v2 = vsel %vm614_vm3, %v1291_v1, -inf }
 0x5ee   :  { %1299 = vmax.xlane.f32.xlu1 %v1298_v2  ;;  %v2196_v3 = vpop.f32.mrf.mxu1  ;;  %v1850_v2 = vld [vmem:[#allocation13] sm:$0xff] }
 0x5ff   :  { %1398 = vrot.lane.b32.xlu1 %v2657_v45, %s2481_s8 }
 0x603   :  { %1317 = vrot.lane.b32.xlu1 %v2653_v43, %s2481_s8 }
 0x607   :  { %1396 = vrot.lane.b32.xlu1 %v2679_v8, %s2481_s8 }
 0x60b   :  { %1561 = vrot.lane.b32.xlu1 %v2617_v33, %s2482_s15 }
 0x60f   :  { %1559 = vrot.lane.b32.xlu1 %v2629_v37, %s2482_s15 }
 0x613   :  { %1557 = vrot.lane.b32.xlu1 %v2639_v38, %s2482_s15 }
 0x667   :  { %v1297_v4 = vpop.xlane.xlu0 %1296 }
 0x668   :  { %v1301_v5 = vsub.f32 %v1209_v60, %v1297_v4 }
 0x66a   :  { %v1303_v6 = vmul.f32 1.442695, %v1301_v5 }
 0x66c   :  { %2283 = vpow2.f32 %v1303_v6 }
 0x677   :  { %v1300_v7 = vpop.xlane.xlu1 %1299 }
 0x678   :  { %v1302_v37 = vsub.f32 %v1291_v1, %v1300_v7  ;;  %v1851_v1 = vld [vmem:[#allocation13 + $0x8] sm:$0xff] }
 0x679   :  { %v2284_v9 = vpop.eup %2283 }
 0x67a   :  { %v1307_v10 = vsel %vm614_vm3, %v2284_v9, 0.0  ;;  %v1305_v38 = vmul.f32 1.442695, %v1302_v37 }
 0x67b   :  { %v1399_v11 = vpop.permute.xlu1 %1398  ;;  %1308 = vadd.xlane.f32.xlu0 %v1307_v10 }
 0x67c   :  { %2205 = vmatpush3.msra.mxu1 %v1399_v11  ;;  %2285 = vpow2.f32 %v1305_v38 }
 0x67d   :  { %2206 = vmatprep.subr.mxu1 %v2478_v18 }
 0x67f   :  { %v1318_v33 = vpop.permute.xlu1 %1317 }
 0x683   :  { %v1397_v12 = vpop.permute.xlu1 %1396 }
 0x684   :  { %2207 = vmatpush3.msra.mxu1 %v1397_v12 }
 0x685   :  { %2218 = vmatprep.subr.mxu1 %v2478_v18 }
 0x687   :  { %v1562_v22 = vpop.permute.xlu1 %1561 }
 0x689   :  { %v2286_v13 = vpop.eup %2285 }
 0x68a   :  { %v1310_v14 = vsel %vm614_vm3, %v2286_v13, 0.0 }
 0x68b   :  { %v1560_v27 = vpop.permute.xlu1 %1559 }
 0x68f   :  { %v1558_v28 = vpop.permute.xlu1 %1557 }
 0x691   :  { %1319 = vrot.lane.b32.xlu0 %v2651_v41, %s2481_s8 }
 0x695   :  { %1479 = vrot.lane.b32.xlu0 %v2607_v25, %s2482_s15 }
 0x6b4   :  { %1311 = vadd.xlane.f32.xlu0 %v1310_v14 }
 0x6ca   :  { %1477 = vrot.lane.b32.xlu0 %v2612_v29, %s2482_s15 }
 0x6ce   :  { %1475 = vrot.lane.b32.xlu0 %v2625_v36, %s2482_s15 }
 0x704   :  { %v1309_v15 = vpop.xlane.xlu0 %1308 }
 0x705   :  { %2287 = vrcp.f32 %v1309_v15 }
 0x708   :  { %v1320_v16 = vpop.permute.xlu0 %1319 }
 0x709   :  { %2198 = vmatpush3.msra.mxu0 %v1320_v16 }
 0x70a   :  { %2199 = vmatprep.subr.mxu0 %v2478_v18 }
 0x70b   :  { %2200 = vmatpush3.msra.mxu0 %v1318_v33 }
 0x70c   :  { %2211 = vmatprep.subr.mxu0 %v2478_v18  ;;  %v1480_v19 = vpop.permute.xlu0 %1479 }
 0x712   :  { %v2288_v25 = vpop.eup %2287 }
 0x713   :  { %v1315_v17 = vmul.f32 %v2288_v25, %v2284_v9 }
 0x715   :  { %2202 = vmatmul.mubr.msk.f32.vlgmr.msra.gmra.mxu0 %vm614_vm3, %v1315_v17 }
 0x716   :  { %2212 = vmatpush3.xpose.msk.msra.mxu0 %vm455_vm2, %v1480_v19  ;;  %2215 = vmatprep.mubr.msk.f32.mxu0 %vm2479_vm1, %v2478_v18 }
 0x717   :  { %2213 = vmatprep.subr.mxu0 %v2478_v18 }
 0x73d   :  { %v1312_v29 = vpop.xlane.xlu0 %1311 }
 0x73e   :  { %2289 = vrcp.f32 %v1312_v29 }
 0x741   :  { %v1478_v36 = vpop.permute.xlu0 %1477 }
 0x742   :  { %2214 = vmatpush3.xpose.msk.msra.mxu0 %vm455_vm2, %v1478_v36 }
 0x743   :  { %2225 = vmatprep.subr.mxu0 %v2478_v18 }
 0x745   :  { %v1476_v21 = vpop.permute.xlu0 %1475 }
 0x746   :  { %2216 = vmatmul.mubr.msk.f32.vlgmr.msra.gmra.mxu0 %vm455_vm2, %v1476_v21 }
 0x747   :  { %2229 = vmatprep.mubr.msk.f32.mxu0 %vm2479_vm1, %v2478_v18 }
 0x74b   :  { %v2290_v24 = vpop.eup %2289 }
 0x74c   :  { %v1316_v26 = vmul.f32 %v2290_v24, %v2286_v13 }
 0x74e   :  { %2209 = vmatmul.mubr.msk.f32.vlgmr.msra.gmra.mxu1 %vm614_vm3, %v1316_v26 }
 0x74f   :  { %2219 = vmatpush3.xpose.msk.msra.mxu1 %vm455_vm2, %v1562_v22  ;;  %2222 = vmatprep.mubr.msk.f32.mxu1 %vm2479_vm1, %v2478_v18 }
 0x750   :  { %2220 = vmatprep.subr.mxu1 %v2478_v18 }
 0x753   :  { %2221 = vmatpush3.xpose.msk.msra.mxu1 %vm455_vm2, %v1560_v27 }
 0x754   :  { %2232 = vmatprep.subr.mxu1 %v2478_v18 }
 0x756   :  { %2223 = vmatmul.mubr.msk.f32.vlgmr.msra.gmra.mxu1 %vm455_vm2, %v1558_v28 }
 0x757   :  { %2236 = vmatprep.mubr.msk.f32.mxu1 %vm2479_vm1, %v2478_v18 }
 0x7d5   :  { %v1392_v30 = vpop.f32.mrf.mxu0 }
 0x7d7   :  { %v2203_v31 = vpop.f32.mrf.mxu0 }
 0x806   :  { %v1553_v32 = vpop.f32.mrf.mxu0 }
 0x807   :  { %v1639_v34 = vsel %vm614_vm3, %v1553_v32, -inf }
 0x808   :  { %1640 = vmax.xlane.f32.xlu0 %v1639_v34  ;;  %v2217_v35 = vpop.f32.mrf.mxu0 }
 0x80e   :  { %v1471_v39 = vpop.f32.mrf.mxu1 }
 0x810   :  { %v2210_v40 = vpop.f32.mrf.mxu1 }
 0x816   :  { %v1635_v42 = vpop.f32.mrf.mxu1 }
 0x817   :  { %v1642_v44 = vsel %vm614_vm3, %v1635_v42, -inf }
 0x818   :  { %1643 = vmax.xlane.f32.xlu1 %v1642_v44  ;;  %v2224_v46 = vpop.f32.mrf.mxu1 }
 0x829   :  { %1742 = vrot.lane.b32.xlu1 %v2657_v45, %s2482_s15 }
 0x82d   :  { %1661 = vrot.lane.b32.xlu1 %v2653_v43, %s2482_s15 }
 0x831   :  { %1740 = vrot.lane.b32.xlu1 %v2679_v8, %s2482_s15 }
 0x835   :  { %1823 = vrot.lane.b32.xlu1 %v2752_v63, %s2472_s23 }
 0x839   :  { %1831 = vrot.lane.b32.xlu1 %v1471_v39, %s2483_s3 }
 0x891   :  { %v1641_v47 = vpop.xlane.xlu0 %1640 }
 0x892   :  { %v1645_v48 = vsub.f32 %v1553_v32, %v1641_v47 }
 0x894   :  { %v1647_v49 = vmul.f32 1.442695, %v1645_v48 }
 0x896   :  { %2291 = vpow2.f32 %v1647_v49 }
 0x8a1   :  { %v1644_v50 = vpop.xlane.xlu1 %1643 }
 0x8a2   :  { %v1646_v51 = vsub.f32 %v1635_v42, %v1644_v50 }
 0x8a3   :  { %v2292_v52 = vpop.eup %2291 }
 0x8a4   :  { %v1649_v53 = vmul.f32 1.442695, %v1646_v51  ;;  %v1651_v45 = vsel %vm614_vm3, %v2292_v52, 0.0 }
 0x8a5   :  { %v1743_v54 = vpop.permute.xlu1 %1742  ;;  %1652 = vadd.xlane.f32.xlu0 %v1651_v45 }
 0x8a6   :  { %2293 = vpow2.f32 %v1649_v53  ;;  %2233 = vmatpush3.msra.mxu1 %v1743_v54 }
 0x8a7   :  { %2234 = vmatprep.subr.mxu1 %v2478_v18 }
 0x8a9   :  { %v1662_v43 = vpop.permute.xlu1 %1661 }
 0x8ad   :  { %v1741_v8 = vpop.permute.xlu1 %1740 }
 0x8ae   :  { %2235 = vmatpush3.msra.mxu1 %v1741_v8 }
 0x8b1   :  { %v1824_v9 = vpop.permute.xlu1 %1823 }
 0x8b2   :  { %v1844_v38 = vsel %vm455_vm2, %v2701_v23, %v1824_v9 }
 0x8b3   :  { %v2294_v55 = vpop.eup %2293 }
 0x8b4   :  { %v1654_v56 = vsel %vm614_vm3, %v2294_v55, 0.0 }
 0x8b5   :  { %1655 = vadd.xlane.f32.xlu0 %v1654_v56  ;;  %v1832_v37 = vpop.permute.xlu1 %1831 }
 0x8b6   :  { %v1846_v13 = vsel %vm614_vm3, %v1844_v38, %v1832_v37 }
 0x8cb   :  { %1663 = vrot.lane.b32.xlu0 %v2651_v41, %s2482_s15  ;;  %v1853_v41 = vld [vmem:[#allocation13 + $0x18] sm:$0xff] }
 0x8cf   :  { %1821 = vrot.lane.b32.xlu0 %v2749_v58, %s2472_s23  ;;  %v1852_v58 = vld [vmem:[#allocation13 + $0x10] sm:$0xff] }
 0x8d3   :  { %1829 = vrot.lane.b32.xlu0 %v1392_v30, %s2483_s3 }
 0x92e   :  { %v1653_v57 = vpop.xlane.xlu0 %1652 }
 0x92f   :  { %2295 = vrcp.f32 %v1653_v57 }
 0x93c   :  { %v2296_v60 = vpop.eup %2295 }
 0x93d   :  { %v1659_v62 = vmul.f32 %v2296_v60, %v2292_v52 }
 0x93e   :  { %v1656_v59 = vpop.xlane.xlu0 %1655 }
 0x93f   :  { %2297 = vrcp.f32 %v1656_v59 }
 0x942   :  { %v1664_v61 = vpop.permute.xlu0 %1663 }
 0x943   :  { %2226 = vmatpush3.msra.mxu0 %v1664_v61 }
 0x944   :  { %2227 = vmatprep.subr.mxu0 %v2478_v18 }
 0x945   :  { %2228 = vmatpush3.msra.mxu0 %v1662_v43 }
 0x946   :  { %2230 = vmatmul.mubr.msk.f32.vlgmr.msra.gmra.mxu0 %vm614_vm3, %v1659_v62  ;;  %2239 = vmatprep.subr.mxu0 %v1853_v41  ;;  %v1822_v6 = vpop.permute.xlu0 %1821 }
 0x947   :  { %2240 = vmatpush3.msra.mxu0 %v1853_v41  ;;  %v1843_v10 = vsel %vm455_vm2, %v2698_v20, %v1822_v6  ;;  %v2009_v20 = vld [vmem:[%s2850_s10] ss:$0 sm:$0xff] }
 0x948   :  { %2241 = vmatprep.subr.mxu0 %v1852_v58 }
 0x949   :  { %2242 = vmatpush3.msra.mxu0 %v1852_v58 }
 0x94a   :  { %2243 = vmatprep.subr.mxu0 %v1851_v1  ;;  %v1830_v7 = vpop.permute.xlu0 %1829 }
 0x94b   :  { %2244 = vmatpush3.msra.mxu0 %v1851_v1  ;;  %v1845_v11 = vsel %vm614_vm3, %v1843_v10, %v1830_v7 }
 0x94c   :  { %v2298_v63 = vpop.eup %2297  ;;  %2245 = vmatprep.subr.mxu0 %v1850_v2 }
 0x94d   :  { %v1660_v0 = vmul.f32 %v2298_v63, %v2294_v55  ;;  %2246 = vmatpush3.msra.mxu0 %v1850_v2 }
 0x94f   :  { %2237 = vmatmul.mubr.msk.f32.vlgmr.msra.gmra.mxu1 %vm614_vm3, %v1660_v0 }
 0xa06   :  { %v1736_v18 = vpop.f32.mrf.mxu0 }
 0xa07   :  { %1837 = vrot.lane.b32.xlu0 %v1736_v18, %s2484_s16 }
 0xa08   :  { %v2231_v3 = vpop.f32.mrf.mxu0 }
 0xa0f   :  { %v1815_v4 = vpop.f32.mrf.mxu1 }
 0xa10   :  { %1839 = vrot.lane.b32.xlu1 %v1815_v4, %s2484_s16 }
 0xa11   :  { %v2238_v5 = vpop.f32.mrf.mxu1 }
 0xa79   :  { %v1838_v33 = vpop.permute.xlu0 %1837 }
 0xa7a   :  { %v1848_v12 = vsel %vm1847_vm4, %v1845_v11, %v1838_v33 }
 0xa7b   :  { %2247 = vmatprep.mubr.msk.f32.mxu0 %vm155_vm0, %v1848_v12 }
 0xa82   :  { %v1840_v14 = vpop.permute.xlu1 %1839 }
 0xa83   :  { %v1849_v15 = vsel %vm1847_vm4, %v1846_v13, %v1840_v14 }
 0xa84   :  { %2248 = vmatmul.mubr.msk.f32.vlgmr.msra.gmra.mxu0 %vm155_vm0, %v1849_v15 }
 0xb44   :  { %v2249_v16 = vpop.f32.mrf.mxu0 }
 0xb45   :  { %v1939_v25 = vadd.f32 %v2249_v16, %v2009_v20 }
 0xb46   :  { %v1933_v17 = vpop.f32.mrf.mxu0 }
 0xb47   :  { %1943 = vst.msk [vmem:[#allocation14 + $0x8] sm:$0xff] %vm155_vm0, %v1939_v25  ;;  %v1934_v19 = vadd.f32 %v2009_v20, %v1933_v17 }
 0xb49   :  { %1942 = vst.msk [vmem:[#allocation14] sm:$0xff] %vm155_vm0, %v1934_v19 }
 0xb4a   :  { %2450 = shalt.err (!%p2447_p11)
}
 0xb4b   :  { %1955 = dma.vmem_to_hbm [thread:$0]  %s1950_s20, 256, %s2851_s11, [#allocation4], %s2471_s22, %s2471_s22, %s2472_s23  }
 0xb4c   :  { %2467 = dma.done.wait [#allocation4], 256  }
 0xb4d   :  { %2468 = vsyncadd [#allocation4], 4294967040 }
 0xb4e   :  { %1959 = vsyncpa [#allocation3], 1 }
 0xb4f   :  { %1960 = vsyncpa [#allocation6], 1 }
 0xb50   :  { %1961 = vsyncpa [#allocation9], 1 }
 0xb51   :  { %1962 = vsyncpa [#allocation12], 1 }
 0xb52   :  { %1963 = vsyncpa [#allocation4], 1 }

</bundles_post_ra>
